<compile_context>
chip_gen: v7x
topology: tpu7x:2x2x1
jax: 0.10.0
libtpu: 0.0.40
codegen_flags: <defaults>
</compile_context>

<pallas_src>
import functools

import jax
import jax.numpy as jnp
from jax.experimental import pallas as pl
from jax.experimental.pallas import tpu as pltpu


def _infonce_denom_kernel(rows_ref, cols_ref, out_ref, acc_ref, *, inv_temp):
    """Accumulate rowsum(exp(sim/T)) over column tiles; finalize sum(log(denominator))."""
    j = pl.program_id(1)

    @pl.when(j == 0)
    def _init():
        acc_ref[...] = jnp.zeros_like(acc_ref)

    rows = rows_ref[...]                      # (TB, Dp) mxu dtype (pre-normalized)
    cols = cols_ref[...]                      # (TC, Dp) mxu dtype (pre-normalized)

    # Single fused matmul per (row tile, column tile): contract the feature axis of
    # both operands (no transpose copy), f32 accumulation on the MXU.
    s = jax.lax.dot_general(
        rows, cols, dimension_numbers=(((1,), (1,)), ((), ())),
        preferred_element_type=jnp.float32)   # (TB, TC)
    acc_ref[...] += jnp.sum(jnp.exp(s * inv_temp), axis=-1, keepdims=True)

    @pl.when(j == pl.num_programs(1) - 1)
    def _finalize():
        # Remove the eye-masked diagonal term: sim[r,r] = ||row_r||^2 (in MXU dtype).
        rows_f = rows_ref[...].astype(jnp.float32)
        self_sim = jnp.sum(rows_f * rows_f, axis=-1, keepdims=True)   # (TB, 1)
        denom = acc_ref[...] - jnp.exp(self_sim * inv_temp)
        tile_sum = jnp.sum(jnp.log(denom))
        # One lane-dense (8,128) block per row tile; wrapper reads [i, 0, 0].
        out_ref[...] = jnp.full(out_ref.shape, tile_sum, dtype=jnp.float32)


def _vmem_capacity_bytes():
    try:
        return int(pltpu.get_tpu_info().vmem_capacity_bytes)
    except Exception:
        return 64 << 20  # conservative (v7x per-TC)


def _pick_row_tile(n_rows, cap=256):
    """Largest multiple of 8 dividing n_rows (<= cap); prefer >= 2 tiles for megacore."""
    if n_rows % 8 != 0:
        return n_rows
    best, t = 8, 8
    while t <= min(n_rows, cap):
        if n_rows % t == 0:
            best = t
        t += 8
    if best == n_rows and (n_rows // 2) % 8 == 0 and n_rows // 2 > 0:
        best = n_rows // 2          # guarantee >= 2 row tiles (v7x's two TensorCores)
    return best


def _pick_col_tile(n_cols, dp, itemsize, budget_bytes):
    """Resident columns if they fit the budget, otherwise largest streaming tile."""
    if n_cols % 8 != 0:
        return n_cols
    if n_cols * dp * itemsize <= budget_bytes:
        return n_cols               # resident (single column tile, single-buffered)
    best, t = 8, 8
    while t <= n_cols:
        if n_cols % t == 0 and t * dp * itemsize * 2 <= budget_bytes:
            best = t
        t += 8
    return best


def infonce_loss(z_i, z_j, temperature=0.5, *, eps=1e-8, mxu_dtype=jnp.bfloat16,
                 block_rows=None, block_cols=None):
    """InfoNCE loss matching the PyTorch InfoNceLoss.forward semantics."""
    assert z_i.shape == z_j.shape and z_i.ndim == 2
    b, d = z_i.shape
    n = 2 * b
    inv_temp = 1.0 / float(temperature)

    # ---------- one-time wrapper-side prep (hoisted out of the kernel) ----------
    reps = jnp.concatenate([z_i, z_j], axis=0).astype(jnp.float32)        # (2B, D)
    ssq = jnp.sum(reps * reps, axis=-1, keepdims=True)
    inv_norm = jnp.minimum(jax.lax.rsqrt(ssq), jnp.float32(1.0 / eps))    # 1/max(||x||, eps)
    reps_n = reps * inv_norm                                              # normalized, f32

    # Exact f32 positive term: pos[r] = <zn_i[r], zn_j[r]> appears for rows r and r+B.
    pos_sum = 2.0 * jnp.sum(reps_n[:b] * reps_n[b:])

    # Pad features to a lane multiple (zero columns change neither norms nor dots).
    dp = ((d + 127) // 128) * 128
    if dp != d:
        reps_n = jnp.pad(reps_n, ((0, 0), (0, dp - d)))
    cols_arr = reps_n.astype(mxu_dtype)                                   # single cast, in HBM

    itemsize = jnp.dtype(mxu_dtype).itemsize
    tb = block_rows if block_rows is not None else _pick_row_tile(n)
    assert n % tb == 0 and (tb % 8 == 0 or tb == n)
    col_budget = _vmem_capacity_bytes() // 4
    tc = block_cols if block_cols is not None else _pick_col_tile(n, dp, itemsize, col_budget)
    assert n % tc == 0 and (tc % 8 == 0 or tc == n)
    n_row_tiles = n // tb
    n_col_tiles = n // tc

    kernel = functools.partial(_infonce_denom_kernel, inv_temp=inv_temp)

    # VMEM budget: row-tile buffers + column buffers + sim/exp strips + scratch + out.
    need = (2 * tb * dp * itemsize
            + (1 if n_col_tiles == 1 else 2) * tc * dp * itemsize
            + 2 * tb * tc * 4
            + tb * 128 * 4
            + 2 * 8 * 128 * 4)
    vmem_limit = int(min(128 << 20, 2 * need + (16 << 20)))

    def _call(single_buffer_cols):
        cols_kwargs = {}
        if single_buffer_cols and hasattr(pl, "Buffered"):
            # Constant-index resident columns don't need double buffering.
            cols_kwargs["pipeline_mode"] = pl.Buffered(1)
        return pl.pallas_call(
            kernel,
            grid=(n_row_tiles, n_col_tiles),                   # reduction (cols) axis last
            in_specs=[
                pl.BlockSpec((tb, dp), lambda i, j: (i, 0)),               # row tile
                pl.BlockSpec((tc, dp), lambda i, j: (j, 0), **cols_kwargs),  # column tile
            ],
            out_specs=pl.BlockSpec((1, 8, 128), lambda i, j: (i, 0, 0)),
            out_shape=jax.ShapeDtypeStruct((n_row_tiles, 8, 128), jnp.float32),
            scratch_shapes=[pltpu.VMEM((tb, 1), jnp.float32)],             # running rowsum
            compiler_params=pltpu.CompilerParams(
                dimension_semantics=("parallel", "arbitrary"),
                vmem_limit_bytes=vmem_limit),
        )(cols_arr, cols_arr)

    try:
        tile_logden = _call(single_buffer_cols=(n_col_tiles == 1))
    except Exception:
        # Fallback if single-buffering via pl.Buffered(1) is unsupported on this version.
        tile_logden = _call(single_buffer_cols=False)

    log_den_sum = jnp.sum(tile_logden[:, 0, 0])
    return (log_den_sum - jnp.float32(inv_temp) * pos_sum) / jnp.float32(n)


def _infonce_ref(z_i, z_j, temperature=0.5, eps=1e-8):
    """Pure-JAX reference mirroring the PyTorch module."""
    b = z_i.shape[0]
    reps = jnp.concatenate([z_i, z_j], axis=0).astype(jnp.float32)
    norms = jnp.maximum(jnp.linalg.norm(reps, axis=-1, keepdims=True), eps)
    xn = reps / norms
    sim = xn @ xn.T
    n = 2 * b
    pos = jnp.concatenate(
        [jnp.diagonal(sim, offset=b), jnp.diagonal(sim, offset=-b)], axis=0)
    mask = 1.0 - jnp.eye(n, dtype=jnp.float32)
    nom = jnp.exp(pos / temperature)
    den = jnp.sum(mask * jnp.exp(sim / temperature), axis=1)
    return jnp.sum(-jnp.log(nom / den)) / n


if __name__ == "__main__":
    key = jax.random.PRNGKey(0)
    k1, k2 = jax.random.split(key)
    B, D = 16, 32  # small batch of embedding pairs, hidden=32
    z_i = jax.random.normal(k1, (B, D), dtype=jnp.float32)
    z_j = jax.random.normal(k2, (B, D), dtype=jnp.float32)

    ref = _infonce_ref(z_i, z_j, temperature=0.5)

    # Default path: bf16 MXU operands, resident columns (single column tile),
    # 2 row tiles on the "parallel" axis.
    loss = infonce_loss(z_i, z_j, temperature=0.5)
    jax.block_until_ready(loss)
    assert jnp.allclose(loss, ref, atol=1e-2, rtol=1e-2), (loss, ref)

    # f32 MXU operands + forced column streaming (exercises the flash-style
    # accumulator over the "arbitrary" column axis): 4 row tiles x 2 column tiles.
    loss_stream = infonce_loss(z_i, z_j, temperature=0.5, mxu_dtype=jnp.float32,
                               block_rows=8, block_cols=16)
    jax.block_until_ready(loss_stream)
    assert jnp.allclose(loss_stream, ref, atol=1e-3, rtol=1e-3), (loss_stream, ref)

    print("KERNEL_OK")
</pallas_src>

<mosaic_0001>
module attributes {stable_mosaic.version = 11 : i64} {
  func.func @_infonce_denom_kernel(%arg0: i32, %arg1: i32, %arg2: memref<16x128xbf16, #tpu.memory_space<vmem>>, %arg3: memref<32x128xbf16, #tpu.memory_space<vmem>>, %arg4: memref<1x8x128xf32, #tpu.memory_space<vmem>>, %arg5: memref<16x1xf32, #tpu.memory_space<vmem>>) attributes {dimension_semantics = [#tpu.dimension_semantics<parallel>, #tpu.dimension_semantics<arbitrary>], iteration_bounds = array<i64: 2, 1>, scalar_prefetch = 0 : i64, scratch_operands = 1 : i64, tpu.core_type = #tpu.core_type<tc>, window_params = [{transform_indices = @transform_0, window_bounds = array<i64: 16, 128>}, {pipeline_mode = #tpu.pipeline_mode<synchronous>, transform_indices = @transform_1, window_bounds = array<i64: 32, 128>}, {transform_indices = @transform_2, window_bounds = array<i64: 1, 8, 128>}]} {
    %c0_i32 = arith.constant 0 : i32
    %0 = arith.cmpi eq, %arg1, %c0_i32 : i32
    %1 = arith.extui %0 : i1 to i32
    %c0_i32_0 = arith.constant 0 : i32
    %2 = arith.cmpi ne, %1, %c0_i32_0 : i32
    scf.if %2 {
      %cst_12 = arith.constant 0.000000e+00 : f32
      %17 = vector.broadcast %cst_12 : f32 to vector<16x1xf32>
      %c0_13 = arith.constant 0 : index
      %c0_14 = arith.constant 0 : index
      %18 = vector.load %arg5[%c0_13, %c0_14] : memref<16x1xf32, #tpu.memory_space<vmem>>, vector<16x1xf32>
      tpu.vector_store %arg5[%c0_13, %c0_14], %17 {strides = array<i32>} : memref<16x1xf32, #tpu.memory_space<vmem>>, vector<16x1xf32>,
    } else {
    }
    %c0 = arith.constant 0 : index
    %c0_1 = arith.constant 0 : index
    %3 = vector.load %arg2[%c0, %c0_1] : memref<16x128xbf16, #tpu.memory_space<vmem>>, vector<16x128xbf16>
    %c0_2 = arith.constant 0 : index
    %c0_3 = arith.constant 0 : index
    %4 = vector.load %arg3[%c0_2, %c0_3] : memref<32x128xbf16, #tpu.memory_space<vmem>>, vector<32x128xbf16>
    %cst = arith.constant dense<0.000000e+00> : vector<16x32xf32>
    %5 = tpu.matmul %3, %4, %cst {dimension_numbers = #tpu.dot_dimension_numbers<[1], [1], [0], [0], [0, 0, 1, 0], [], []>} : vector<16x128xbf16>, vector<32x128xbf16>, vector<16x32xf32> -> vector<16x32xf32>
    %c0_4 = arith.constant 0 : index
    %c0_5 = arith.constant 0 : index
    %6 = vector.load %arg5[%c0_4, %c0_5] : memref<16x1xf32, #tpu.memory_space<vmem>>, vector<16x1xf32>
    %cst_6 = arith.constant 2.000000e+00 : f32
    %7 = vector.broadcast %cst_6 : f32 to vector<16x32xf32>
    %8 = arith.mulf %5, %7 : vector<16x32xf32>
    %9 = math.exp %8 : vector<16x32xf32>
    %cst_7 = arith.constant dense<0.000000e+00> : vector<16xf32>
    %10 = vector.multi_reduction <add>, %9, %cst_7 [1] : vector<16x32xf32> to vector<16xf32>
    %11 = vector.shape_cast %10 : vector<16xf32> to vector<16x1xf32>
    %12 = arith.addf %6, %11 : vector<16x1xf32>
    %c0_8 = arith.constant 0 : index
    %c0_9 = arith.constant 0 : index
    %13 = vector.load %arg5[%c0_8, %c0_9] : memref<16x1xf32, #tpu.memory_space<vmem>>, vector<16x1xf32>
    tpu.vector_store %arg5[%c0_8, %c0_9], %12 {strides = array<i32>} : memref<16x1xf32, #tpu.memory_space<vmem>>, vector<16x1xf32>,
    %c0_i32_10 = arith.constant 0 : i32
    %14 = arith.cmpi eq, %arg1, %c0_i32_10 : i32
    %15 = arith.extui %14 : i1 to i32
    %c0_i32_11 = arith.constant 0 : i32
    %16 = arith.cmpi ne, %15, %c0_i32_11 : i32
    scf.if %16 {
      %c0_12 = arith.constant 0 : index
      %c0_13 = arith.constant 0 : index
      %17 = vector.load %arg2[%c0_12, %c0_13] : memref<16x128xbf16, #tpu.memory_space<vmem>>, vector<16x128xbf16>
      %18 = arith.extf %17 : vector<16x128xbf16> to vector<16x128xf32>
      %19 = arith.mulf %18, %18 : vector<16x128xf32>
      %cst_14 = arith.constant dense<0.000000e+00> : vector<16xf32>
      %20 = vector.multi_reduction <add>, %19, %cst_14 [1] : vector<16x128xf32> to vector<16xf32>
      %21 = vector.shape_cast %20 : vector<16xf32> to vector<16x1xf32>
      %c0_15 = arith.constant 0 : index
      %c0_16 = arith.constant 0 : index
      %22 = vector.load %arg5[%c0_15, %c0_16] : memref<16x1xf32, #tpu.memory_space<vmem>>, vector<16x1xf32>
      %cst_17 = arith.constant 2.000000e+00 : f32
      %23 = vector.broadcast %cst_17 : f32 to vector<16x1xf32>
      %24 = arith.mulf %21, %23 : vector<16x1xf32>
      %25 = math.exp %24 : vector<16x1xf32>
      %26 = arith.subf %22, %25 : vector<16x1xf32>
      %27 = math.log %26 : vector<16x1xf32>
      %28 = vector.shape_cast %27 : vector<16x1xf32> to vector<1x16x1xf32>
      %cst_18 = arith.constant dense<0.000000e+00> : vector<1xf32>
      %29 = vector.multi_reduction <add>, %28, %cst_18 [1, 2] : vector<1x16x1xf32> to vector<1xf32>
      %30 = vector.shape_cast %29 : vector<1xf32> to vector<1x1x1xf32>
      %31 = vector.extract %30[0, 0, 0] : f32 from vector<1x1x1xf32>
      %32 = vector.broadcast %31 : f32 to vector<1x8x128xf32>
      %c0_19 = arith.constant 0 : index
      %c0_20 = arith.constant 0 : index
      %c0_21 = arith.constant 0 : index
      %33 = vector.load %arg4[%c0_19, %c0_20, %c0_21] : memref<1x8x128xf32, #tpu.memory_space<vmem>>, vector<1x8x128xf32>
      tpu.vector_store %arg4[%c0_19, %c0_20, %c0_21], %32 {strides = array<i32>} : memref<1x8x128xf32, #tpu.memory_space<vmem>>, vector<1x8x128xf32>,
    } else {
    }
    return
  }
  func.func @transform_0(%arg0: i32, %arg1: i32) -> (i32, i32) {
    %c0_i32 = arith.constant 0 : i32
    %c0_i32_0 = arith.constant 0 : i32
    return %arg0, %c0_i32 : i32, i32
  }
  func.func @transform_1(%arg0: i32, %arg1: i32) -> (i32, i32) {
    %c0_i32 = arith.constant 0 : i32
    %c0_i32_0 = arith.constant 0 : i32
    return %arg1, %c0_i32 : i32, i32
  }
  func.func @transform_2(%arg0: i32, %arg1: i32) -> (i32, i32, i32) {
    %c0_i32 = arith.constant 0 : i32
    %c0_i32_0 = arith.constant 0 : i32
    %c0_i32_1 = arith.constant 0 : i32
    return %arg0, %c0_i32, %c0_i32_0 : i32, i32, i32
  }
}

module attributes {stable_mosaic.version = 11 : i64} {
  func.func @_infonce_denom_kernel(%arg0: i32, %arg1: i32, %arg2: memref<16x128xbf16, #tpu.memory_space<vmem>>, %arg3: memref<32x128xbf16, #tpu.memory_space<vmem>>, %arg4: memref<1x8x128xf32, #tpu.memory_space<vmem>>, %arg5: memref<16x1xf32, #tpu.memory_space<vmem>>) attributes {dimension_semantics = [#tpu.dimension_semantics<parallel>, #tpu.dimension_semantics<arbitrary>], iteration_bounds = array<i64: 2, 1>, scalar_prefetch = 0 : i64, scratch_operands = 1 : i64, tpu.core_type = #tpu.core_type<tc>, window_params = [{transform_indices = @transform_0, window_bounds = array<i64: 16, 128>}, {transform_indices = @transform_1, window_bounds = array<i64: 32, 128>}, {transform_indices = @transform_2, window_bounds = array<i64: 1, 8, 128>}]} {
    %c0_i32 = arith.constant 0 : i32
    %0 = arith.cmpi eq, %arg1, %c0_i32 : i32
    %1 = arith.extui %0 : i1 to i32
    %c0_i32_0 = arith.constant 0 : i32
    %2 = arith.cmpi ne, %1, %c0_i32_0 : i32
    scf.if %2 {
      %cst_12 = arith.constant 0.000000e+00 : f32
      %17 = vector.broadcast %cst_12 : f32 to vector<16x1xf32>
      %c0_13 = arith.constant 0 : index
      %c0_14 = arith.constant 0 : index
      %18 = vector.load %arg5[%c0_13, %c0_14] : memref<16x1xf32, #tpu.memory_space<vmem>>, vector<16x1xf32>
      tpu.vector_store %arg5[%c0_13, %c0_14], %17 {strides = array<i32>} : memref<16x1xf32, #tpu.memory_space<vmem>>, vector<16x1xf32>,
    } else {
    }
    %c0 = arith.constant 0 : index
    %c0_1 = arith.constant 0 : index
    %3 = vector.load %arg2[%c0, %c0_1] : memref<16x128xbf16, #tpu.memory_space<vmem>>, vector<16x128xbf16>
    %c0_2 = arith.constant 0 : index
    %c0_3 = arith.constant 0 : index
    %4 = vector.load %arg3[%c0_2, %c0_3] : memref<32x128xbf16, #tpu.memory_space<vmem>>, vector<32x128xbf16>
    %cst = arith.constant dense<0.000000e+00> : vector<16x32xf32>
    %5 = tpu.matmul %3, %4, %cst {dimension_numbers = #tpu.dot_dimension_numbers<[1], [1], [0], [0], [0, 0, 1, 0], [], []>} : vector<16x128xbf16>, vector<32x128xbf16>, vector<16x32xf32> -> vector<16x32xf32>
    %c0_4 = arith.constant 0 : index
    %c0_5 = arith.constant 0 : index
    %6 = vector.load %arg5[%c0_4, %c0_5] : memref<16x1xf32, #tpu.memory_space<vmem>>, vector<16x1xf32>
    %cst_6 = arith.constant 2.000000e+00 : f32
    %7 = vector.broadcast %cst_6 : f32 to vector<16x32xf32>
    %8 = arith.mulf %5, %7 : vector<16x32xf32>
    %9 = math.exp %8 : vector<16x32xf32>
    %cst_7 = arith.constant dense<0.000000e+00> : vector<16xf32>
    %10 = vector.multi_reduction <add>, %9, %cst_7 [1] : vector<16x32xf32> to vector<16xf32>
    %11 = vector.shape_cast %10 : vector<16xf32> to vector<16x1xf32>
    %12 = arith.addf %6, %11 : vector<16x1xf32>
    %c0_8 = arith.constant 0 : index
    %c0_9 = arith.constant 0 : index
    %13 = vector.load %arg5[%c0_8, %c0_9] : memref<16x1xf32, #tpu.memory_space<vmem>>, vector<16x1xf32>
    tpu.vector_store %arg5[%c0_8, %c0_9], %12 {strides = array<i32>} : memref<16x1xf32, #tpu.memory_space<vmem>>, vector<16x1xf32>,
    %c0_i32_10 = arith.constant 0 : i32
    %14 = arith.cmpi eq, %arg1, %c0_i32_10 : i32
    %15 = arith.extui %14 : i1 to i32
    %c0_i32_11 = arith.constant 0 : i32
    %16 = arith.cmpi ne, %15, %c0_i32_11 : i32
    scf.if %16 {
      %c0_12 = arith.constant 0 : index
      %c0_13 = arith.constant 0 : index
      %17 = vector.load %arg2[%c0_12, %c0_13] : memref<16x128xbf16, #tpu.memory_space<vmem>>, vector<16x128xbf16>
      %18 = arith.extf %17 : vector<16x128xbf16> to vector<16x128xf32>
      %19 = arith.mulf %18, %18 : vector<16x128xf32>
      %cst_14 = arith.constant dense<0.000000e+00> : vector<16xf32>
      %20 = vector.multi_reduction <add>, %19, %cst_14 [1] : vector<16x128xf32> to vector<16xf32>
      %21 = vector.shape_cast %20 : vector<16xf32> to vector<16x1xf32>
      %c0_15 = arith.constant 0 : index
      %c0_16 = arith.constant 0 : index
      %22 = vector.load %arg5[%c0_15, %c0_16] : memref<16x1xf32, #tpu.memory_space<vmem>>, vector<16x1xf32>
      %cst_17 = arith.constant 2.000000e+00 : f32
      %23 = vector.broadcast %cst_17 : f32 to vector<16x1xf32>
      %24 = arith.mulf %21, %23 : vector<16x1xf32>
      %25 = math.exp %24 : vector<16x1xf32>
      %26 = arith.subf %22, %25 : vector<16x1xf32>
      %27 = math.log %26 : vector<16x1xf32>
      %28 = vector.shape_cast %27 : vector<16x1xf32> to vector<1x16x1xf32>
      %cst_18 = arith.constant dense<0.000000e+00> : vector<1xf32>
      %29 = vector.multi_reduction <add>, %28, %cst_18 [1, 2] : vector<1x16x1xf32> to vector<1xf32>
      %30 = vector.shape_cast %29 : vector<1xf32> to vector<1x1x1xf32>
      %31 = vector.extract %30[0, 0, 0] : f32 from vector<1x1x1xf32>
      %32 = vector.broadcast %31 : f32 to vector<1x8x128xf32>
      %c0_19 = arith.constant 0 : index
      %c0_20 = arith.constant 0 : index
      %c0_21 = arith.constant 0 : index
      %33 = vector.load %arg4[%c0_19, %c0_20, %c0_21] : memref<1x8x128xf32, #tpu.memory_space<vmem>>, vector<1x8x128xf32>
      tpu.vector_store %arg4[%c0_19, %c0_20, %c0_21], %32 {strides = array<i32>} : memref<1x8x128xf32, #tpu.memory_space<vmem>>, vector<1x8x128xf32>,
    } else {
    }
    return
  }
  func.func @transform_0(%arg0: i32, %arg1: i32) -> (i32, i32) {
    %c0_i32 = arith.constant 0 : i32
    %c0_i32_0 = arith.constant 0 : i32
    return %arg0, %c0_i32 : i32, i32
  }
  func.func @transform_1(%arg0: i32, %arg1: i32) -> (i32, i32) {
    %c0_i32 = arith.constant 0 : i32
    %c0_i32_0 = arith.constant 0 : i32
    return %arg1, %c0_i32 : i32, i32
  }
  func.func @transform_2(%arg0: i32, %arg1: i32) -> (i32, i32, i32) {
    %c0_i32 = arith.constant 0 : i32
    %c0_i32_0 = arith.constant 0 : i32
    %c0_i32_1 = arith.constant 0 : i32
    return %arg0, %c0_i32, %c0_i32_0 : i32, i32, i32
  }
}

</mosaic_0001>

<bundles_post_ra>
// kernel: tpu_custom_call.1
= control target key start
LH: loop header
LB: loop body
LE: loop exit
PB: predicated region body
PF: predicated region fallthrough
CT: control target
= control target key end

     0   :  { %7 = vsyncpa [#allocation4], 0  ;;  %s967_s0 = inlined_call_operand.hbm [shape: bf16[32,128], index: 0, kind: input, shape index: {}]   ;;  %s968_s1 = inlined_call_operand.hbm [shape: bf16[32,128], index: 1, kind: input, shape index: {}]   ;;  %s969_s2 = inlined_call_operand.hbm [shape: f32[2,8,128], index: 2, kind: output, shape index: {}]  }
   0x1   :  { %9 = vsyncpa [#allocation4 + $0x1], 0 }
   0x2   :  { %10 = vsyncpa [#allocation7], 0 }
   0x3   :  { %11 = vsyncpa [#allocation5], 0 }
   0x4   :  { %13 = vsyncpa [#allocation5 + $0x1], 0  ;;  %s734_s9 = smov 0   ;;  %s736_s10 = smov 0  }
   0x5   :  { %s738_s11 = smov 0   ;;  %s740_s12 = smov 0  }
   0x6   :  { %s742_s13 = smov 0   ;;  %s744_s14 = smov 0  }
   0x7 LB: > { %s437_s15 = sadd.s32 4294967295, %s710_s14   ;;  %s438_s16 = sadd.s32 4294967294, %s710_s14   ;;  %s710_s14 = sphi %s744_s14, %s19_s14   ;;  %s706_s13 = sphi %s742_s13, %s993_s13   ;;  %s702_s12 = sphi %s740_s12, %s992_s12   ;;  %s698_s11 = sphi %s738_s11, %s991_s11   ;;  %s694_s10 = sphi %s736_s10, %s990_s10   ;;  %s690_s9 = sphi %s734_s9, %s989_s9  }
   0x8   : > { %p51_p0 = scmp.ne.s32.totalorder %s694_s10, %s690_s9  ;;  %p768_p1 = scmp.eq.s32.totalorder %s437_s15, 0 }
   0x9   : > { %p772_p2 = scmp.eq.s32.totalorder %s437_s15, 1  ;;  %p107_p3 = scmp.eq.s32.totalorder %s438_s16, 1 }
   0xa   : > { %s974_s17 = scalar_select %p768_p1, 1, 0 }
   0xb   : > { %s975_s18 = scalar_select %p772_p2, 1, 0 }
   0xc   : > { %p778_p4 = por %p768_p1, %p51_p0  ;;  %p439_p5 = scmp.ge.s32.totalorder %s710_s14, 1 }
   0xd   : > { %p783_p6 = por %p107_p3, %p51_p0  ;;  %p114_p7 = scmp.lt.s32.totalorder %s710_s14, 3 }
   0xe   : > { %s976_s19 = scalar_select %p778_p4, 1, 0 }
   0xf   : > { %s977_s20 = scalar_select %p783_p6, 1, 0 }
  0x10   : > { %p788_p8 = pnand %p439_p5, %p114_p7  ;;  %s712_s22 = smov [#allocation6]  }
  0x11   : > { %s129_s23 = sshll.u32 %s712_s22, 4  ;;  %s31_s25 = sadd.s32 1, %s706_s13  ;;  %s130_s23 = int_to_ptr.vmem [resolvable:$true] %s129_s23 }
  0x12   : > { %s978_s21 = scalar_select %p788_p8, 1, 0 }
  0x13   : > { %p482_p9 = pneg %p788_p8  ;;  %s566_s28 = scalar_lea.hbm %s968_s1, 256 }
  0x14   : > { %p567_p12 = scmp.ne.s32.totalorder %s968_s1, %s566_s28  ;;  %p573_p5 = scmp.lt.u32.totalorder %s566_s28, %s968_s1 }
  0x15   : > { %p797_p11 = pnand %p482_p9, %p768_p1 }
  0x17   : > { %p568_p13 = pneg %p797_p11 }
  0x19   : > { %p569_p0 = pnand %p568_p13, %p567_p12 }
  0x1b   : > { %p570_p3 = pneg %p569_p0 }
  0x1d   : > { %p575_p7 = pnand %p573_p5, %p570_p3 }
  0x1f   : > { %578 = shalt.err (!%p575_p7)
}
  0x20   : > { %s579_s5 = scalar_lea.vmem %s130_s23, 256  ;;  %p587_p1 = scmp.lt.s32.totalorder %s130_s23, %s130_s23 }
  0x21   : > { %p580_p9 = scmp.ne.s32.totalorder %s130_s23, %s579_s5  ;;  %p588_p4 = scmp.lt.s32.totalorder %s579_s5, %s579_s5 }
  0x23   : > { %p582_p10 = pnand %p580_p9, %p568_p13  ;;  %p589_p8 = por %p588_p4, %p587_p1 }
  0x25   : > { %p583_p6 = pneg %p582_p10 }
  0x27   : > { %p590_p2 = pnand %p589_p8, %p583_p6 }
  0x29   : > { %593 = shalt.err (!%p590_p2)
}
  0x2a   : > { %s713_s6 = smov 64   ;;  %s714_s7 = smov 4  }
  0x2b   : > { %485 = dma.hbm_to_vmem [thread:$0]  (!%p797_p11), %s968_s1, 256, %s130_s23, [#allocation7], %s713_s6, %s713_s6, %s714_s7  }
  0x2c   : > { %p33_p1 = scmp.ge.s32.totalorder %s31_s25, 2  ;;  %s38_s16 = sadd.s32 1, %s698_s11 }
  0x2d   : > { %p45_p2 = scmp.ne.s32.totalorder %s698_s11, %s694_s10  ;;  %p46_p4 = scmp.eq.s32.totalorder %s710_s14, 0 }
  0x2e   : > { %s995_s25 = smov (%p33_p1, %s31_s25), 0  ;;  %p981_p8 = scmp.ne.s32.totalorder %s975_s18, 0 }
  0x2f   : > { %p827_p6 = por %p46_p4, %p45_p2  ;;  %s35_s26 = ssub.s32 %s706_s13, %s995_s25 }
  0x30   : > { %p833_p10 = por %p981_p8, %p45_p2  ;;  %p495_p12 = scmp.lt.s32.totalorder %s710_s14, 2 }
  0x31   : > { %p36_p11 = scmp.eq.s32.totalorder %s35_s26, 0  ;;  %s143_s23 = sand.u32 1, %s698_s11  }
  0x32   : > { %s442_s27 = sshll.u32 %s143_s23, 3  ;;  %s456_s29 = sshll.u32 %s706_s13, 7 }
  0x33   : > { %s842_s28 = scalar_select %p36_p11, %s698_s11, %s38_s16  }
  0x34   : > { %s848_s4 = scalar_lea.hbm %s967_s0, %s456_s29  ;;  %s147_s18 = scalar_lea.vmem [#allocation3], %s442_s27 }
  0x35   : > { %s154_s5 = sshll.u32 %s147_s18, 4  ;;  %p854_p13 = pnand %p495_p12, %p827_p6  ;;  %s850_s5 = int_to_ptr.vmem [resolvable:$true] %s154_s5 }
  0x36   : > { %s858_s15 = scalar_lea.sflag [#allocation4], %s143_s23  ;;  %s594_s16 = scalar_lea.hbm %s848_s4, 128 }
  0x37   : > { %p595_p0 = scmp.ne.s32.totalorder %s848_s4, %s594_s16  ;;  %p596_p3 = pneg %p854_p13 }
  0x38   : > { %s599_s22 = scalar_lea.hbm %s967_s0, 256  ;;  %p600_p9 = scmp.lt.u32.totalorder %s848_s4, %s967_s0 }
  0x39   : > { %p597_p5 = pnand %p596_p3, %p595_p0  ;;  %p601_p1 = scmp.lt.u32.totalorder %s599_s22, %s594_s16 }
  0x3a   : > { %p603_p4 = scmp.lt.u32.totalorder %s594_s16, %s848_s4 }
  0x3b   : > { %p598_p7 = pneg %p597_p5  ;;  %p602_p2 = por %p601_p1, %p600_p9 }
  0x3d   : > { %p604_p6 = por %p603_p4, %p602_p2 }
  0x3f   : > { %p605_p8 = pnand %p604_p6, %p598_p7 }
  0x41   : > { %608 = shalt.err (!%p605_p8)
}
  0x42   : > { %s609_s23 = scalar_lea.vmem %s850_s5, 128  ;;  %s715_s3 = smov [#allocation3]  }
  0x43   : > { %p610_p12 = scmp.ne.s32.totalorder %s850_s5, %s609_s23  ;;  %s614_s18 = sshll.u32 %s715_s3, 4  ;;  %s615_s18 = int_to_ptr.vmem [resolvable:$false] %s614_s18 }
  0x44   : > { %s616_s26 = scalar_lea.vmem %s615_s18, 256  ;;  %p617_p5 = scmp.lt.s32.totalorder %s850_s5, %s615_s18 }
  0x45   : > { %p612_p11 = pnand %p610_p12, %p596_p3  ;;  %p618_p9 = scmp.lt.s32.totalorder %s616_s26, %s609_s23 }
  0x47   : > { %p613_p0 = pneg %p612_p11  ;;  %p619_p1 = por %p618_p9, %p617_p5 }
  0x49   : > { %p620_p2 = pnand %p619_p1, %p613_p0 }
  0x4b   : > { %623 = shalt.err (!%p620_p2)
}
  0x4c   : > { %489 = dma.hbm_to_vmem [thread:$0]  (!%p854_p13), %s848_s4, 128, %s850_s5, %s858_s15, %s713_s6, %s713_s6, %s714_s7  }
  0x4d   : > { %p984_p3 = scmp.ne.s32.totalorder %s978_s21, 0 }
  0x4e   : > { %s892_s16 = sand.u32 (!%p984_p3), 1, %s694_s10   ;;  %p985_p7 = scmp.ne.s32.totalorder (!%p984_p3), %s976_s19, 0 }
  0x4f   : > { %166 = sbr.rel (%p984_p3) target bundleno = 728 (0x2d8), region = 28  ;;  %s446_s27 = sshll.u32 (!%p984_p3), %s892_s16, 3 }
  0x50   : > { %s169_s22 = scalar_lea.sflag (!%p984_p3), [#allocation4], %s892_s16  ;;  %s172_s8 = scalar_lea.vmem (!%p984_p3), [#allocation3], %s446_s27 }
  0x56   : > { %677 = dma.done.wait (%p985_p7), %s169_s22, 128  }
  0x57   : > { %679 = vsyncadd (%p985_p7), %s169_s22, 4294967168  ;;  %p986_p13 = scmp.ne.s32.totalorder %s974_s17, 0 }
  0x59   : > { %681 = dma.done.wait (%p986_p13), [#allocation7], 256  }
  0x5a   : > { %683 = vsyncadd (%p986_p13), [#allocation7], 4294967040  ;;  %v716_v0 = vmov 0.0   ;;  %vm717_vm0 = vmmov 0   ;;  %v551_v1 = vld [vmem:[#allocation6] sm:$0xff]   ;;  %v552_v2 = vld [vmem:[#allocation6 + $0x8] sm:$0xff]  }
  0x5b   : > { %464 = vmatprep.subr.bf16.mxu0 %v716_v0  ;;  %468 = vmatprep.mubr.msk.bf16.mxu0 %vm717_vm0, %v716_v0  ;;  %v553_v3 = vld [vmem:[%s172_s8] sm:$0xff]   ;;  %vm204_vm1 = vcmask 7168   ;;  %vm280_vm2 = vcmask 261120   ;;  %s196_s17 = scalar_lea.vmem [#allocation8], %s446_s27  ;;  %s453_s21 = sshll.u32 %s702_s12, 7 }
  0x5c   : > { %465 = vmatpush3.bf16.xpose.msra.mxu0 %v551_v1  ;;  %v458_v4 = vld [vmem:[%s172_s8] sm:$0xff]   ;;  %205 = vst.msk [vmem:[#allocation2] sm:$0xff] %vm204_vm1, %v716_v0  ;;  %206 = vst.msk [vmem:[#allocation2 + $0x8] sm:$0xff] %vm204_vm1, %v716_v0  ;;  %s347_s19 = sshll.u32 %s196_s17, 4  ;;  %s920_s5 = scalar_lea.hbm %s969_s2, %s453_s21  ;;  %s915_s19 = int_to_ptr.vmem [resolvable:$true] %s347_s19 }
  0x5d   : > { %466 = vmatprep.subr.bf16.mxu0 %v716_v0  ;;  %v459_v5 = vunpack.c.l.bf16 %v458_v4  ;;  %v460_v6 = vunpack.c.h.bf16 %v458_v4  ;;  %s334_s15 = scalar_lea.sflag [#allocation5], %s892_s16  ;;  %s624_s29 = scalar_lea.vmem %s915_s19, 128 }
  0x5e   : > { %p625_p4 = scmp.ne.s32.totalorder %s915_s19, %s624_s29  ;;  %s718_s12 = smov [#allocation8]  }
  0x5f   : > { %v299_v7 = vmul.f32 %v459_v5, %v459_v5  ;;  %v300_v8 = vmul.f32 %v460_v6, %v460_v6  ;;  %s628_s30 = sshll.u32 %s718_s12, 4  ;;  %s629_s30 = int_to_ptr.vmem [resolvable:$false] %s628_s30 }
  0x60   : > { %p626_p6 = pnand %p625_p4, %p833_p10  ;;  %s630_s23 = scalar_lea.vmem %s629_s30, 256 }
  0x61   : > { %301 = vadd.xlane.f32.xlu0 %v299_v7  ;;  %p631_p12 = scmp.lt.s32.totalorder %s915_s19, %s629_s30  ;;  %p632_p11 = scmp.lt.s32.totalorder %s630_s23, %s624_s29 }
  0x62   : > { %p627_p8 = pneg %p626_p6 }
  0x63   : > { %v272_v27 = vld [vmem:[#allocation2] sm:$0xff]  ;;  %v273_v30 = vld [vmem:[#allocation2 + $0x8] sm:$0xff]  ;;  %p633_p0 = por %p632_p11, %p631_p12 }
  0x64   : > { %467 = vmatpush3.bf16.xpose.msra.mxu0 %v552_v2 }
  0x65   : > { %303 = vadd.xlane.f32.xlu0 %v300_v8  ;;  %p634_p5 = pnand %p633_p0, %p627_p8 }
  0x6b   : > { %469 = vmatmul.mubr.bf16.vlgmr.msra.gmra.mrb[0].mxu0 %v553_v3 }
  0xee   : > { %v302_v21 = vpop.xlane.xlu0 %301 }
  0xef   : > { %v307_v22 = vmul.f32 2.0, %v302_v21 }
  0xf1   : > { %v309_v24 = vmul.f32 1.442695, %v307_v22 }
  0xf2   : > { %v304_v23 = vpop.xlane.xlu0 %303 }
  0xf3   : > { %v308_v25 = vmul.f32 2.0, %v304_v23 }
  0xf5   : > { %v311_v26 = vmul.f32 1.442695, %v308_v25 }
 0x13e   : > { %v265_v9 = vpop.f32.mrb[0].mxu0 }
 0x13f   : > { %v274_v10 = vmul.f32 2.0, %v265_v9  ;;  %v470_v11 = vpop.f32.mrb[1].mxu0 }
 0x140   : > { %v268_v12 = vpop.f32.mrb[2].mxu0 }
 0x141   : > { %v276_v13 = vmul.f32 1.442695, %v274_v10  ;;  %v275_v14 = vmul.f32 2.0, %v268_v12  ;;  %v471_v15 = vpop.f32.mrb[3].mxu0 }
 0x143   : > { %554 = vpow2.f32 %v276_v13  ;;  %v278_v16 = vmul.f32 1.442695, %v275_v14 }
 0x145   : > { %556 = vpow2.f32 %v278_v16 }
 0x146   : > { %558 = vpow2.f32 %v309_v24 }
 0x147   : > { %560 = vpow2.f32 %v311_v26 }
 0x14d   : > { %v555_v17 = vpop.eup %554 }
 0x14e   : > { %v281_v18 = vsel %vm280_vm2, %v555_v17, 0.0 }
 0x14f   : > { %v557_v19 = vpop.eup %556  ;;  %282 = vadd.xlane.f32.xlu1 %v281_v18 }
 0x150   : > { %v284_v20 = vsel %vm280_vm2, %v557_v19, 0.0  ;;  %v559_v33 = vpop.eup %558 }
 0x151   : > { %v561_v36 = vpop.eup %560 }
 0x153   : > { %285 = vadd.xlane.f32.xlu1 %v284_v20 }
 0x1dc   : > { %v283_v28 = vpop.xlane.xlu1 %282 }
 0x1dd   : > { %v287_v29 = vadd.f32 %v283_v28, %v272_v27 }
 0x1df   : > { %290 = vst.msk [vmem:[#allocation2] sm:$0xff] %vm204_vm1, %v287_v29 }
 0x1e0   : > { %v286_v31 = vpop.xlane.xlu1 %285 }
 0x1e1   : > { %v288_v32 = vadd.f32 %v286_v31, %v273_v30 }
 0x1e3   : > { %291 = vst.msk [vmem:[#allocation2 + $0x8] sm:$0xff] %vm204_vm1, %v288_v32 }
 0x1e6   : > { %v305_v34 = vld [vmem:[#allocation2] sm:$0xff] }
 0x1e7   : > { %v313_v35 = vsub.f32 %v305_v34, %v559_v33 }
 0x1e9   : > { %562 = vlog2.f32 %v313_v35 }
 0x1ea   : > { %v306_v37 = vld [vmem:[#allocation2 + $0x8] sm:$0xff] }
 0x1eb   : > { %v314_v38 = vsub.f32 %v306_v37, %v561_v36 }
 0x1ed   : > { %564 = vlog2.f32 %v314_v38 }
 0x1f3   : > { %v563_v39 = vpop.eup %562 }
 0x1f4   : > { %v316_v40 = vmul.f32 0.6931472, %v563_v39 }
 0x1f6   : > { %v319_v43 = vsel %vm204_vm1, %v316_v40, 0.0 }
 0x1f7   : > { %v565_v41 = vpop.eup %564 }
 0x1f8   : > { %v318_v42 = vmul.f32 0.6931472, %v565_v41 }
 0x1fa   : > { %v320_v44 = vsel %vm204_vm1, %v318_v42, 0.0 }
 0x1fb   : > { %v321_v45 = vadd.f32 %v320_v44, %v319_v43 }
 0x1fd   : > { %322 = vadd.xlane.f32.xlu0 %v321_v45 }
 0x28a   : > { %v323_v46 = vpop.xlane.xlu0 %322 }
 0x28b   : > { %v324_v47 = vrot.slane %v323_v46, 4 }
 0x28d   : > { %v325_v48 = vadd.f32 %v324_v47, %v323_v46 }
 0x28f   : > { %v326_v49 = vrot.slane %v325_v48, 2 }
 0x291   : > { %v327_v50 = vadd.f32 %v326_v49, %v325_v48 }
 0x293   : > { %v328_v51 = vrot.slane %v327_v50, 1 }
 0x295   : > { %v329_v52 = vadd.f32 %v328_v51, %v327_v50 }
 0x297   : > { %472 = vpush %v329_v52 }
 0x2c8   : > { %s473_s6 = spop %472 }
 0x2c9   : > { %v331_v53 = vstv %s473_s6 }
 0x2ca   : > { %332 = vst [vmem:[%s196_s17] sm:$0xff] %v331_v53 }
 0x2cb   : > { %637 = shalt.err (!%p634_p5)
}
 0x2cc   : > { %s638_s3 = scalar_lea.hbm %s920_s5, 128  ;;  %s642_s16 = scalar_lea.hbm %s969_s2, 256 }
 0x2cd   : > { %p639_p9 = scmp.ne.s32.totalorder %s920_s5, %s638_s3  ;;  %p643_p3 = scmp.lt.u32.totalorder %s920_s5, %s969_s2 }
 0x2ce   : > { %p644_p7 = scmp.lt.u32.totalorder %s642_s16, %s638_s3  ;;  %p646_p4 = scmp.lt.u32.totalorder %s638_s3, %s920_s5 }
 0x2cf   : > { %p640_p1 = pnand %p639_p9, %p833_p10 }
 0x2d0   : > { %p645_p13 = por %p644_p7, %p643_p3 }
 0x2d1   : > { %p641_p2 = pneg %p640_p1 }
 0x2d2   : > { %p647_p6 = por %p646_p4, %p645_p13 }
 0x2d4   : > { %p648_p8 = pnand %p647_p6, %p641_p2 }
 0x2d6   : > { %651 = shalt.err (!%p648_p8)
}
 0x2d7   : > { %480 = dma.vmem_to_hbm [thread:$0]  (%p833_p10), %s915_s19, 128, %s920_s5, %s334_s15  }
 0x2d8 PF: > { %s359_s8 = sand.u32 1, %s690_s9   ;;  %p987_p12 = scmp.ne.s32.totalorder %s977_s20, 0 }
 0x2d9   : > { %p988_p11 = scmp.ge.s32.totalorder %s710_s14, 2  ;;  %s360_s17 = scalar_lea.sflag [#allocation5], %s359_s8 }
 0x2db   : > { %p491_p0 = pnand %p988_p11, %p987_p12 }
 0x2dd   : > { %685 = dma.done.wait (!%p491_p0), %s360_s17, 128  }
 0x2de   : > { %687 = vsyncadd (!%p491_p0), %s360_s17, 4294967168  ;;  %s19_s14 = sadd.s32 1, %s710_s14   ;;  %s989_s9 = smov %s694_s10 }
 0x2df   : > { %p16_p5 = scmp.ge.s32.totalorder %s19_s14, 4   ;;  %s990_s10 = smov %s698_s11 }
 0x2e0   : > { %s991_s11 = smov %s842_s28  ;;  %s992_s12 = smov %s706_s13 }
 0x2e1   : > { %s993_s13 = smov %s995_s25  ;;  %18 = sbr.rel (!%p16_p5) target bundleno = 7 (0x7), region = 86 }
 0x2e8   :  { %365 = vsyncpa [#allocation4], 1 }
 0x2e9   :  { %367 = vsyncpa [#allocation4 + $0x1], 1 }
 0x2ea   :  { %368 = vsyncpa [#allocation7], 1 }
 0x2eb   :  { %369 = vsyncpa [#allocation5], 1 }
 0x2ec   :  { %371 = vsyncpa [#allocation5 + $0x1], 1 }

// kernel: tpu_custom_call.1
= control target key start
LH: loop header
LB: loop body
LE: loop exit
PB: predicated region body
PF: predicated region fallthrough
CT: control target
= control target key end

     0   :  { %7 = vsyncpa [#allocation4], 0  ;;  %s967_s0 = inlined_call_operand.hbm [shape: bf16[32,128], index: 0, kind: input, shape index: {}]   ;;  %s968_s1 = inlined_call_operand.hbm [shape: bf16[32,128], index: 1, kind: input, shape index: {}]   ;;  %s969_s2 = inlined_call_operand.hbm [shape: f32[2,8,128], index: 2, kind: output, shape index: {}]  }
   0x1   :  { %9 = vsyncpa [#allocation4 + $0x1], 0 }
   0x2   :  { %10 = vsyncpa [#allocation7], 0 }
   0x3   :  { %11 = vsyncpa [#allocation5], 0 }
   0x4   :  { %13 = vsyncpa [#allocation5 + $0x1], 0  ;;  %s734_s9 = smov 0   ;;  %s736_s10 = smov 0  }
   0x5   :  { %s738_s11 = smov 0   ;;  %s740_s12 = smov 0  }
   0x6   :  { %s742_s13 = smov 0   ;;  %s744_s14 = smov 0  }
   0x7 LB: > { %s437_s15 = sadd.s32 4294967295, %s710_s14   ;;  %s438_s16 = sadd.s32 4294967294, %s710_s14   ;;  %s710_s14 = sphi %s744_s14, %s19_s14   ;;  %s706_s13 = sphi %s742_s13, %s993_s13   ;;  %s702_s12 = sphi %s740_s12, %s992_s12   ;;  %s698_s11 = sphi %s738_s11, %s991_s11   ;;  %s694_s10 = sphi %s736_s10, %s990_s10   ;;  %s690_s9 = sphi %s734_s9, %s989_s9  }
   0x8   : > { %p51_p0 = scmp.ne.s32.totalorder %s694_s10, %s690_s9  ;;  %p768_p1 = scmp.eq.s32.totalorder %s437_s15, 0 }
   0x9   : > { %p772_p2 = scmp.eq.s32.totalorder %s437_s15, 1  ;;  %p107_p3 = scmp.eq.s32.totalorder %s438_s16, 1 }
   0xa   : > { %s974_s17 = scalar_select %p768_p1, 1, 0 }
   0xb   : > { %s975_s18 = scalar_select %p772_p2, 1, 0 }
   0xc   : > { %p778_p4 = por %p768_p1, %p51_p0  ;;  %p439_p5 = scmp.ge.s32.totalorder %s710_s14, 1 }
   0xd   : > { %p783_p6 = por %p107_p3, %p51_p0  ;;  %p114_p7 = scmp.lt.s32.totalorder %s710_s14, 3 }
   0xe   : > { %s976_s19 = scalar_select %p778_p4, 1, 0 }
   0xf   : > { %s977_s20 = scalar_select %p783_p6, 1, 0 }
  0x10   : > { %p788_p8 = pnand %p439_p5, %p114_p7  ;;  %s712_s22 = smov [#allocation6]  }
  0x11   : > { %s129_s23 = sshll.u32 %s712_s22, 4  ;;  %s31_s25 = sadd.s32 1, %s706_s13  ;;  %s130_s23 = int_to_ptr.vmem [resolvable:$true] %s129_s23 }
  0x12   : > { %s978_s21 = scalar_select %p788_p8, 1, 0 }
  0x13   : > { %p482_p9 = pneg %p788_p8  ;;  %s566_s28 = scalar_lea.hbm %s968_s1, 256 }
  0x14   : > { %p567_p12 = scmp.ne.s32.totalorder %s968_s1, %s566_s28  ;;  %p573_p5 = scmp.lt.u32.totalorder %s566_s28, %s968_s1 }
  0x15   : > { %p797_p11 = pnand %p482_p9, %p768_p1 }
  0x17   : > { %p568_p13 = pneg %p797_p11 }
  0x19   : > { %p569_p0 = pnand %p568_p13, %p567_p12 }
  0x1b   : > { %p570_p3 = pneg %p569_p0 }
  0x1d   : > { %p575_p7 = pnand %p573_p5, %p570_p3 }
  0x1f   : > { %578 = shalt.err (!%p575_p7)
}
  0x20   : > { %s579_s5 = scalar_lea.vmem %s130_s23, 256  ;;  %p587_p1 = scmp.lt.s32.totalorder %s130_s23, %s130_s23 }
  0x21   : > { %p580_p9 = scmp.ne.s32.totalorder %s130_s23, %s579_s5  ;;  %p588_p4 = scmp.lt.s32.totalorder %s579_s5, %s579_s5 }
  0x23   : > { %p582_p10 = pnand %p580_p9, %p568_p13  ;;  %p589_p8 = por %p588_p4, %p587_p1 }
  0x25   : > { %p583_p6 = pneg %p582_p10 }
  0x27   : > { %p590_p2 = pnand %p589_p8, %p583_p6 }
  0x29   : > { %593 = shalt.err (!%p590_p2)
}
  0x2a   : > { %s713_s6 = smov 64   ;;  %s714_s7 = smov 4  }
  0x2b   : > { %485 = dma.hbm_to_vmem [thread:$0]  (!%p797_p11), %s968_s1, 256, %s130_s23, [#allocation7], %s713_s6, %s713_s6, %s714_s7  }
  0x2c   : > { %p33_p1 = scmp.ge.s32.totalorder %s31_s25, 2  ;;  %s38_s16 = sadd.s32 1, %s698_s11 }
  0x2d   : > { %p45_p2 = scmp.ne.s32.totalorder %s698_s11, %s694_s10  ;;  %p46_p4 = scmp.eq.s32.totalorder %s710_s14, 0 }
  0x2e   : > { %s995_s25 = smov (%p33_p1, %s31_s25), 0  ;;  %p981_p8 = scmp.ne.s32.totalorder %s975_s18, 0 }
  0x2f   : > { %p827_p6 = por %p46_p4, %p45_p2  ;;  %s35_s26 = ssub.s32 %s706_s13, %s995_s25 }
  0x30   : > { %p833_p10 = por %p981_p8, %p45_p2  ;;  %p495_p12 = scmp.lt.s32.totalorder %s710_s14, 2 }
  0x31   : > { %p36_p11 = scmp.eq.s32.totalorder %s35_s26, 0  ;;  %s143_s23 = sand.u32 1, %s698_s11  }
  0x32   : > { %s442_s27 = sshll.u32 %s143_s23, 3  ;;  %s456_s29 = sshll.u32 %s706_s13, 7 }
  0x33   : > { %s842_s28 = scalar_select %p36_p11, %s698_s11, %s38_s16  }
  0x34   : > { %s848_s4 = scalar_lea.hbm %s967_s0, %s456_s29  ;;  %s147_s18 = scalar_lea.vmem [#allocation3], %s442_s27 }
  0x35   : > { %s154_s5 = sshll.u32 %s147_s18, 4  ;;  %p854_p13 = pnand %p495_p12, %p827_p6  ;;  %s850_s5 = int_to_ptr.vmem [resolvable:$true] %s154_s5 }
  0x36   : > { %s858_s15 = scalar_lea.sflag [#allocation4], %s143_s23  ;;  %s594_s16 = scalar_lea.hbm %s848_s4, 128 }
  0x37   : > { %p595_p0 = scmp.ne.s32.totalorder %s848_s4, %s594_s16  ;;  %p596_p3 = pneg %p854_p13 }
  0x38   : > { %s599_s22 = scalar_lea.hbm %s967_s0, 256  ;;  %p600_p9 = scmp.lt.u32.totalorder %s848_s4, %s967_s0 }
  0x39   : > { %p597_p5 = pnand %p596_p3, %p595_p0  ;;  %p601_p1 = scmp.lt.u32.totalorder %s599_s22, %s594_s16 }
  0x3a   : > { %p603_p4 = scmp.lt.u32.totalorder %s594_s16, %s848_s4 }
  0x3b   : > { %p598_p7 = pneg %p597_p5  ;;  %p602_p2 = por %p601_p1, %p600_p9 }
  0x3d   : > { %p604_p6 = por %p603_p4, %p602_p2 }
  0x3f   : > { %p605_p8 = pnand %p604_p6, %p598_p7 }
  0x41   : > { %608 = shalt.err (!%p605_p8)
}
  0x42   : > { %s609_s23 = scalar_lea.vmem %s850_s5, 128  ;;  %s715_s3 = smov [#allocation3]  }
  0x43   : > { %p610_p12 = scmp.ne.s32.totalorder %s850_s5, %s609_s23  ;;  %s614_s18 = sshll.u32 %s715_s3, 4  ;;  %s615_s18 = int_to_ptr.vmem [resolvable:$false] %s614_s18 }
  0x44   : > { %s616_s26 = scalar_lea.vmem %s615_s18, 256  ;;  %p617_p5 = scmp.lt.s32.totalorder %s850_s5, %s615_s18 }
  0x45   : > { %p612_p11 = pnand %p610_p12, %p596_p3  ;;  %p618_p9 = scmp.lt.s32.totalorder %s616_s26, %s609_s23 }
  0x47   : > { %p613_p0 = pneg %p612_p11  ;;  %p619_p1 = por %p618_p9, %p617_p5 }
  0x49   : > { %p620_p2 = pnand %p619_p1, %p613_p0 }
  0x4b   : > { %623 = shalt.err (!%p620_p2)
}
  0x4c   : > { %489 = dma.hbm_to_vmem [thread:$0]  (!%p854_p13), %s848_s4, 128, %s850_s5, %s858_s15, %s713_s6, %s713_s6, %s714_s7  }
  0x4d   : > { %p984_p3 = scmp.ne.s32.totalorder %s978_s21, 0 }
  0x4e   : > { %s892_s16 = sand.u32 (!%p984_p3), 1, %s694_s10   ;;  %p985_p7 = scmp.ne.s32.totalorder (!%p984_p3), %s976_s19, 0 }
  0x4f   : > { %166 = sbr.rel (%p984_p3) target bundleno = 728 (0x2d8), region = 28  ;;  %s446_s27 = sshll.u32 (!%p984_p3), %s892_s16, 3 }
  0x50   : > { %s169_s22 = scalar_lea.sflag (!%p984_p3), [#allocation4], %s892_s16  ;;  %s172_s8 = scalar_lea.vmem (!%p984_p3), [#allocation3], %s446_s27 }
  0x56   : > { %677 = dma.done.wait (%p985_p7), %s169_s22, 128  }
  0x57   : > { %679 = vsyncadd (%p985_p7), %s169_s22, 4294967168  ;;  %p986_p13 = scmp.ne.s32.totalorder %s974_s17, 0 }
  0x59   : > { %681 = dma.done.wait (%p986_p13), [#allocation7], 256  }
  0x5a   : > { %683 = vsyncadd (%p986_p13), [#allocation7], 4294967040  ;;  %v716_v0 = vmov 0.0   ;;  %vm717_vm0 = vmmov 0   ;;  %v551_v1 = vld [vmem:[#allocation6] sm:$0xff]   ;;  %v552_v2 = vld [vmem:[#allocation6 + $0x8] sm:$0xff]  }
  0x5b   : > { %464 = vmatprep.subr.bf16.mxu0 %v716_v0  ;;  %468 = vmatprep.mubr.msk.bf16.mxu0 %vm717_vm0, %v716_v0  ;;  %v553_v3 = vld [vmem:[%s172_s8] sm:$0xff]   ;;  %vm204_vm1 = vcmask 7168   ;;  %vm280_vm2 = vcmask 261120   ;;  %s196_s17 = scalar_lea.vmem [#allocation8], %s446_s27  ;;  %s453_s21 = sshll.u32 %s702_s12, 7 }
  0x5c   : > { %465 = vmatpush3.bf16.xpose.msra.mxu0 %v551_v1  ;;  %v458_v4 = vld [vmem:[%s172_s8] sm:$0xff]   ;;  %205 = vst.msk [vmem:[#allocation2] sm:$0xff] %vm204_vm1, %v716_v0  ;;  %206 = vst.msk [vmem:[#allocation2 + $0x8] sm:$0xff] %vm204_vm1, %v716_v0  ;;  %s347_s19 = sshll.u32 %s196_s17, 4  ;;  %s920_s5 = scalar_lea.hbm %s969_s2, %s453_s21  ;;  %s915_s19 = int_to_ptr.vmem [resolvable:$true] %s347_s19 }
  0x5d   : > { %466 = vmatprep.subr.bf16.mxu0 %v716_v0  ;;  %v459_v5 = vunpack.c.l.bf16 %v458_v4  ;;  %v460_v6 = vunpack.c.h.bf16 %v458_v4  ;;  %s334_s15 = scalar_lea.sflag [#allocation5], %s892_s16  ;;  %s624_s29 = scalar_lea.vmem %s915_s19, 128 }
  0x5e   : > { %p625_p4 = scmp.ne.s32.totalorder %s915_s19, %s624_s29  ;;  %s718_s12 = smov [#allocation8]  }
  0x5f   : > { %v299_v7 = vmul.f32 %v459_v5, %v459_v5  ;;  %v300_v8 = vmul.f32 %v460_v6, %v460_v6  ;;  %s628_s30 = sshll.u32 %s718_s12, 4  ;;  %s629_s30 = int_to_ptr.vmem [resolvable:$false] %s628_s30 }
  0x60   : > { %p626_p6 = pnand %p625_p4, %p833_p10  ;;  %s630_s23 = scalar_lea.vmem %s629_s30, 256 }
  0x61   : > { %301 = vadd.xlane.f32.xlu0 %v299_v7  ;;  %p631_p12 = scmp.lt.s32.totalorder %s915_s19, %s629_s30  ;;  %p632_p11 = scmp.lt.s32.totalorder %s630_s23, %s624_s29 }
  0x62   : > { %p627_p8 = pneg %p626_p6 }
  0x63   : > { %v272_v27 = vld [vmem:[#allocation2] sm:$0xff]  ;;  %v273_v30 = vld [vmem:[#allocation2 + $0x8] sm:$0xff]  ;;  %p633_p0 = por %p632_p11, %p631_p12 }
  0x64   : > { %467 = vmatpush3.bf16.xpose.msra.mxu0 %v552_v2 }
  0x65   : > { %303 = vadd.xlane.f32.xlu0 %v300_v8  ;;  %p634_p5 = pnand %p633_p0, %p627_p8 }
  0x6b   : > { %469 = vmatmul.mubr.bf16.vlgmr.msra.gmra.mrb[0].mxu0 %v553_v3 }
  0xee   : > { %v302_v21 = vpop.xlane.xlu0 %301 }
  0xef   : > { %v307_v22 = vmul.f32 2.0, %v302_v21 }
  0xf1   : > { %v309_v24 = vmul.f32 1.442695, %v307_v22 }
  0xf2   : > { %v304_v23 = vpop.xlane.xlu0 %303 }
  0xf3   : > { %v308_v25 = vmul.f32 2.0, %v304_v23 }
  0xf5   : > { %v311_v26 = vmul.f32 1.442695, %v308_v25 }
 0x13e   : > { %v265_v9 = vpop.f32.mrb[0].mxu0 }
 0x13f   : > { %v274_v10 = vmul.f32 2.0, %v265_v9  ;;  %v470_v11 = vpop.f32.mrb[1].mxu0 }
 0x140   : > { %v268_v12 = vpop.f32.mrb[2].mxu0 }
 0x141   : > { %v276_v13 = vmul.f32 1.442695, %v274_v10  ;;  %v275_v14 = vmul.f32 2.0, %v268_v12  ;;  %v471_v15 = vpop.f32.mrb[3].mxu0 }
 0x143   : > { %554 = vpow2.f32 %v276_v13  ;;  %v278_v16 = vmul.f32 1.442695, %v275_v14 }
 0x145   : > { %556 = vpow2.f32 %v278_v16 }
 0x146   : > { %558 = vpow2.f32 %v309_v24 }
 0x147   : > { %560 = vpow2.f32 %v311_v26 }
 0x14d   : > { %v555_v17 = vpop.eup %554 }
 0x14e   : > { %v281_v18 = vsel %vm280_vm2, %v555_v17, 0.0 }
 0x14f   : > { %v557_v19 = vpop.eup %556  ;;  %282 = vadd.xlane.f32.xlu1 %v281_v18 }
 0x150   : > { %v284_v20 = vsel %vm280_vm2, %v557_v19, 0.0  ;;  %v559_v33 = vpop.eup %558 }
 0x151   : > { %v561_v36 = vpop.eup %560 }
 0x153   : > { %285 = vadd.xlane.f32.xlu1 %v284_v20 }
 0x1dc   : > { %v283_v28 = vpop.xlane.xlu1 %282 }
 0x1dd   : > { %v287_v29 = vadd.f32 %v283_v28, %v272_v27 }
 0x1df   : > { %290 = vst.msk [vmem:[#allocation2] sm:$0xff] %vm204_vm1, %v287_v29 }
 0x1e0   : > { %v286_v31 = vpop.xlane.xlu1 %285 }
 0x1e1   : > { %v288_v32 = vadd.f32 %v286_v31, %v273_v30 }
 0x1e3   : > { %291 = vst.msk [vmem:[#allocation2 + $0x8] sm:$0xff] %vm204_vm1, %v288_v32 }
 0x1e6   : > { %v305_v34 = vld [vmem:[#allocation2] sm:$0xff] }
 0x1e7   : > { %v313_v35 = vsub.f32 %v305_v34, %v559_v33 }
 0x1e9   : > { %562 = vlog2.f32 %v313_v35 }
 0x1ea   : > { %v306_v37 = vld [vmem:[#allocation2 + $0x8] sm:$0xff] }
 0x1eb   : > { %v314_v38 = vsub.f32 %v306_v37, %v561_v36 }
 0x1ed   : > { %564 = vlog2.f32 %v314_v38 }
 0x1f3   : > { %v563_v39 = vpop.eup %562 }
 0x1f4   : > { %v316_v40 = vmul.f32 0.6931472, %v563_v39 }
 0x1f6   : > { %v319_v43 = vsel %vm204_vm1, %v316_v40, 0.0 }
 0x1f7   : > { %v565_v41 = vpop.eup %564 }
 0x1f8   : > { %v318_v42 = vmul.f32 0.6931472, %v565_v41 }
 0x1fa   : > { %v320_v44 = vsel %vm204_vm1, %v318_v42, 0.0 }
 0x1fb   : > { %v321_v45 = vadd.f32 %v320_v44, %v319_v43 }
 0x1fd   : > { %322 = vadd.xlane.f32.xlu0 %v321_v45 }
 0x28a   : > { %v323_v46 = vpop.xlane.xlu0 %322 }
 0x28b   : > { %v324_v47 = vrot.slane %v323_v46, 4 }
 0x28d   : > { %v325_v48 = vadd.f32 %v324_v47, %v323_v46 }
 0x28f   : > { %v326_v49 = vrot.slane %v325_v48, 2 }
 0x291   : > { %v327_v50 = vadd.f32 %v326_v49, %v325_v48 }
 0x293   : > { %v328_v51 = vrot.slane %v327_v50, 1 }
 0x295   : > { %v329_v52 = vadd.f32 %v328_v51, %v327_v50 }
 0x297   : > { %472 = vpush %v329_v52 }
 0x2c8   : > { %s473_s6 = spop %472 }
 0x2c9   : > { %v331_v53 = vstv %s473_s6 }
 0x2ca   : > { %332 = vst [vmem:[%s196_s17] sm:$0xff] %v331_v53 }
 0x2cb   : > { %637 = shalt.err (!%p634_p5)
}
 0x2cc   : > { %s638_s3 = scalar_lea.hbm %s920_s5, 128  ;;  %s642_s16 = scalar_lea.hbm %s969_s2, 256 }
 0x2cd   : > { %p639_p9 = scmp.ne.s32.totalorder %s920_s5, %s638_s3  ;;  %p643_p3 = scmp.lt.u32.totalorder %s920_s5, %s969_s2 }
 0x2ce   : > { %p644_p7 = scmp.lt.u32.totalorder %s642_s16, %s638_s3  ;;  %p646_p4 = scmp.lt.u32.totalorder %s638_s3, %s920_s5 }
 0x2cf   : > { %p640_p1 = pnand %p639_p9, %p833_p10 }
 0x2d0   : > { %p645_p13 = por %p644_p7, %p643_p3 }
 0x2d1   : > { %p641_p2 = pneg %p640_p1 }
 0x2d2   : > { %p647_p6 = por %p646_p4, %p645_p13 }
 0x2d4   : > { %p648_p8 = pnand %p647_p6, %p641_p2 }
 0x2d6   : > { %651 = shalt.err (!%p648_p8)
}
 0x2d7   : > { %480 = dma.vmem_to_hbm [thread:$0]  (%p833_p10), %s915_s19, 128, %s920_s5, %s334_s15  }
 0x2d8 PF: > { %s359_s8 = sand.u32 1, %s690_s9   ;;  %p987_p12 = scmp.ne.s32.totalorder %s977_s20, 0 }
 0x2d9   : > { %p988_p11 = scmp.ge.s32.totalorder %s710_s14, 2  ;;  %s360_s17 = scalar_lea.sflag [#allocation5], %s359_s8 }
 0x2db   : > { %p491_p0 = pnand %p988_p11, %p987_p12 }
 0x2dd   : > { %685 = dma.done.wait (!%p491_p0), %s360_s17, 128  }
 0x2de   : > { %687 = vsyncadd (!%p491_p0), %s360_s17, 4294967168  ;;  %s19_s14 = sadd.s32 1, %s710_s14   ;;  %s989_s9 = smov %s694_s10 }
 0x2df   : > { %p16_p5 = scmp.ge.s32.totalorder %s19_s14, 4   ;;  %s990_s10 = smov %s698_s11 }
 0x2e0   : > { %s991_s11 = smov %s842_s28  ;;  %s992_s12 = smov %s706_s13 }
 0x2e1   : > { %s993_s13 = smov %s995_s25  ;;  %18 = sbr.rel (!%p16_p5) target bundleno = 7 (0x7), region = 86 }
 0x2e8   :  { %365 = vsyncpa [#allocation4], 1 }
 0x2e9   :  { %367 = vsyncpa [#allocation4 + $0x1], 1 }
 0x2ea   :  { %368 = vsyncpa [#allocation7], 1 }
 0x2eb   :  { %369 = vsyncpa [#allocation5], 1 }
 0x2ec   :  { %371 = vsyncpa [#allocation5 + $0x1], 1 }

</bundles_post_ra>
